<compile_context>
chip_gen: v7x
topology: tpu7x:2x2x1
jax: 0.10.0
libtpu: 0.0.40
codegen_flags: <defaults>
</compile_context>

<pallas_src>
import jax
import jax.numpy as jnp
from jax.experimental import pallas as pl
from jax.experimental.pallas import tpu as pltpu


def _ode_affine_rk4_kernel(x_ref, phi_ref, psi_ref, out_ref):
    """Single-invocation kernel: unrolled affine RK4 recurrence, all resident in VMEM.

    x_ref   : VMEM (B, D)        initial condition
    phi_ref : VMEM (T-1, D, D)   per-interval RK4 transition matrices (right-acting)
    psi_ref : VMEM (T-1, 1, D)   per-interval affine offsets
    out_ref : VMEM (T, B, D)     full trajectory (single writeback at kernel end)
    """
    n_steps = phi_ref.shape[0]          # T - 1, compile-time constant
    state = x_ref[...]
    out_ref[0] = state                  # odeint returns the initial condition first
    # Fully-unrolled static loop (T is small and known at trace time); indices
    # are compile-time constants, so every slice/store is static.
    for k in range(n_steps):
        state = (
            jnp.dot(state, phi_ref[k], preferred_element_type=jnp.float32)
            + psi_ref[k]
        )
        out_ref[k + 1] = state


def _rk4_affine_operators(t, W, b):
    """Per-interval affine step operators: one RK4 step of size h for
    f(x) = x @ W^T + b is exactly  x -> x @ Phi(h) + psi(h)  (row-vector x)."""
    hp = jax.lax.Precision.HIGHEST
    A = W.T.astype(jnp.float32)                                  # right-acting
    D = A.shape[0]
    h = (t[1:] - t[:-1]).astype(jnp.float32)                     # (T-1,)
    I = jnp.eye(D, dtype=jnp.float32)
    A2 = jnp.matmul(A, A, precision=hp)
    A3 = jnp.matmul(A2, A, precision=hp)
    A4 = jnp.matmul(A3, A, precision=hp)
    h1 = h[:, None, None]                                        # (T-1,1,1)
    Phi = (I + h1 * A + (h1 ** 2 / 2.0) * A2
           + (h1 ** 3 / 6.0) * A3 + (h1 ** 4 / 24.0) * A4)       # (T-1, D, D)
    M = (h1 * I + (h1 ** 2 / 2.0) * A
         + (h1 ** 3 / 6.0) * A2 + (h1 ** 4 / 24.0) * A3)         # (T-1, D, D)
    psi = jnp.matmul(b.reshape(1, 1, D).astype(jnp.float32), M,
                     precision=hp)                               # (T-1, 1, D)
    return Phi, psi


def ode_net_forward(t, x, W, b):
    """Pallas equivalent of ODE_net.forward(t, x).

    t: (T,) float32 time points
    x: (B, D) float32 initial state
    W: (D, D) float32 linear-dynamics weight (PyTorch Linear: y = x W^T + b)
    b: (D,)  float32 bias
    returns: (T, B, D) float32 trajectory (time-major, odeint convention)
    """
    T = t.shape[0]
    B, D = x.shape
    x = x.astype(jnp.float32)
    if T == 1:
        return x[None]

    Phi, psi = _rk4_affine_operators(t, W, b)

    grid_spec = pltpu.PrefetchScalarGridSpec(
        num_scalar_prefetch=0,
        grid=(1,),                                 # single invocation
        in_specs=[
            pl.BlockSpec((B, D), lambda i: (0, 0)),            # x0
            pl.BlockSpec((T - 1, D, D), lambda i: (0, 0, 0)),  # Phi_k
            pl.BlockSpec((T - 1, 1, D), lambda i: (0, 0, 0)),  # psi_k
        ],
        out_specs=pl.BlockSpec((T, B, D), lambda i: (0, 0, 0)),  # resident full traj
    )

    return pl.pallas_call(
        _ode_affine_rk4_kernel,
        out_shape=jax.ShapeDtypeStruct((T, B, D), jnp.float32),
        grid_spec=grid_spec,
        compiler_params=pltpu.CompilerParams(
            dimension_semantics=("arbitrary",),
        ),
    )(x, Phi, psi)


# ----------------------------- references --------------------------------- #

def _reference_rk4(t, x, W, b):
    """Classic k1..k4 fixed-step RK4 in pure JAX (f32, highest precision)."""
    hp = jax.lax.Precision.HIGHEST

    def f(y):
        return jnp.matmul(y, W.T, precision=hp) + b

    def step(state, idx):
        dt = t[idx] - t[idx - 1]
        k1 = f(state)
        k2 = f(state + 0.5 * dt * k1)
        k3 = f(state + 0.5 * dt * k2)
        k4 = f(state + dt * k3)
        new = state + (dt / 6.0) * (k1 + 2.0 * k2 + 2.0 * k3 + k4)
        return new, new

    _, traj = jax.lax.scan(step, x, jnp.arange(1, t.shape[0]))
    return jnp.concatenate([x[None], traj], axis=0)


def _reference_affine(x, Phi, psi):
    """Same affine recurrence as the kernel, in pure JAX (validates plumbing)."""
    hp = jax.lax.Precision.HIGHEST

    def step(state, op):
        Pk, pk = op
        new = jnp.matmul(state, Pk, precision=hp) + pk
        return new, new

    _, traj = jax.lax.scan(step, x, (Phi, psi))
    return jnp.concatenate([x[None], traj], axis=0)


if __name__ == "__main__":
    key = jax.random.PRNGKey(0)
    k1, k2, k3 = jax.random.split(key, 3)

    T = 8          # number of time points (args.data_size, small)
    B = 8          # batch of initial states
    D = 32         # LQR state dimension

    t = jnp.linspace(0.01, 25.0, T).astype(jnp.float32)
    x = jax.random.normal(k1, (B, D), dtype=jnp.float32)

    # Deterministic, stable linear dynamics: W = 0.05*N(0,1) - 0.5*I
    W = (0.05 * jax.random.normal(k2, (D, D), dtype=jnp.float32)
         - 0.5 * jnp.eye(D, dtype=jnp.float32))
    b = 0.01 * jax.random.normal(k3, (D,), dtype=jnp.float32)

    out = jax.block_until_ready(ode_net_forward(t, x, W, b))
    assert out.shape == (T, B, D)

    # 1) Exact same affine recurrence in pure JAX -> validates Pallas plumbing.
    Phi, psi = _rk4_affine_operators(t, W, b)
    ref_aff = _reference_affine(x, Phi, psi)
    assert jnp.allclose(out, ref_aff, rtol=1e-4, atol=1e-5), "mismatch vs affine reference"

    # 2) Classic k1..k4 RK4 -> validates the affine refactoring of the RK4 step.
    ref_rk4 = _reference_rk4(t, x, W, b)
    assert jnp.allclose(out, ref_rk4, rtol=1e-3, atol=1e-4), "mismatch vs classic RK4 reference"

    print("KERNEL_OK")
</pallas_src>

<mosaic_0001>
module attributes {stable_mosaic.version = 11 : i64} {
  func.func @_ode_affine_rk4_kernel(%arg0: i32, %arg1: memref<8x32xf32, #tpu.memory_space<vmem>>, %arg2: memref<7x32x32xf32, #tpu.memory_space<vmem>>, %arg3: memref<7x1x32xf32, #tpu.memory_space<vmem>>, %arg4: memref<8x8x32xf32, #tpu.memory_space<vmem>>) attributes {dimension_semantics = [#tpu.dimension_semantics<arbitrary>], iteration_bounds = array<i64: 1>, scalar_prefetch = 0 : i64, scratch_operands = 0 : i64, tpu.core_type = #tpu.core_type<tc>, window_params = [{pipeline_mode = #tpu.pipeline_mode<synchronous>, transform_indices = @transform_0, window_bounds = array<i64: 8, 32>}, {pipeline_mode = #tpu.pipeline_mode<synchronous>, transform_indices = @transform_1, window_bounds = array<i64: 7, 32, 32>}, {pipeline_mode = #tpu.pipeline_mode<synchronous>, transform_indices = @transform_2, window_bounds = array<i64: 7, 1, 32>}, {pipeline_mode = #tpu.pipeline_mode<synchronous>, transform_indices = @transform_3, window_bounds = array<i64: 8, 8, 32>}]} {
    %c0 = arith.constant 0 : index
    %c0_0 = arith.constant 0 : index
    %0 = vector.load %arg1[%c0, %c0_0] : memref<8x32xf32, #tpu.memory_space<vmem>>, vector<8x32xf32>
    %c0_1 = arith.constant 0 : index
    %c0_2 = arith.constant 0 : index
    %c0_3 = arith.constant 0 : index
    %1 = vector.load %arg4[%c0_1, %c0_2, %c0_3] : memref<8x8x32xf32, #tpu.memory_space<vmem>>, vector<1x8x32xf32>
    %2 = vector.shape_cast %1 : vector<1x8x32xf32> to vector<8x32xf32>
    %3 = vector.shape_cast %0 : vector<8x32xf32> to vector<1x8x32xf32>
    tpu.vector_store %arg4[%c0_1, %c0_2, %c0_3], %3 {strides = array<i32>} : memref<8x8x32xf32, #tpu.memory_space<vmem>>, vector<1x8x32xf32>,
    %c0_4 = arith.constant 0 : index
    %c0_5 = arith.constant 0 : index
    %c0_6 = arith.constant 0 : index
    %4 = vector.load %arg2[%c0_4, %c0_5, %c0_6] : memref<7x32x32xf32, #tpu.memory_space<vmem>>, vector<1x32x32xf32>
    %5 = vector.shape_cast %4 : vector<1x32x32xf32> to vector<32x32xf32>
    %cst = arith.constant dense<0.000000e+00> : vector<8x32xf32>
    %6 = tpu.matmul %0, %5, %cst {dimension_numbers = #tpu.dot_dimension_numbers<[1], [0], [0], [1], [0, 0, 1, 1], [], []>} : vector<8x32xf32>, vector<32x32xf32>, vector<8x32xf32> -> vector<8x32xf32>
    %c0_7 = arith.constant 0 : index
    %c0_8 = arith.constant 0 : index
    %c0_9 = arith.constant 0 : index
    %7 = vector.load %arg3[%c0_7, %c0_8, %c0_9] : memref<7x1x32xf32, #tpu.memory_space<vmem>>, vector<1x1x32xf32>
    %8 = vector.shape_cast %7 : vector<1x1x32xf32> to vector<1x32xf32>
    %9 = vector.broadcast %8 : vector<1x32xf32> to vector<8x32xf32>
    %10 = arith.addf %6, %9 : vector<8x32xf32>
    %c1 = arith.constant 1 : index
    %c0_10 = arith.constant 0 : index
    %c0_11 = arith.constant 0 : index
    %11 = vector.load %arg4[%c1, %c0_10, %c0_11] : memref<8x8x32xf32, #tpu.memory_space<vmem>>, vector<1x8x32xf32>
    %12 = vector.shape_cast %11 : vector<1x8x32xf32> to vector<8x32xf32>
    %13 = vector.shape_cast %10 : vector<8x32xf32> to vector<1x8x32xf32>
    tpu.vector_store %arg4[%c1, %c0_10, %c0_11], %13 {strides = array<i32>} : memref<8x8x32xf32, #tpu.memory_space<vmem>>, vector<1x8x32xf32>,
    %c1_12 = arith.constant 1 : index
    %c0_13 = arith.constant 0 : index
    %c0_14 = arith.constant 0 : index
    %14 = vector.load %arg2[%c1_12, %c0_13, %c0_14] : memref<7x32x32xf32, #tpu.memory_space<vmem>>, vector<1x32x32xf32>
    %15 = vector.shape_cast %14 : vector<1x32x32xf32> to vector<32x32xf32>
    %cst_15 = arith.constant dense<0.000000e+00> : vector<8x32xf32>
    %16 = tpu.matmul %10, %15, %cst_15 {dimension_numbers = #tpu.dot_dimension_numbers<[1], [0], [0], [1], [0, 0, 1, 1], [], []>} : vector<8x32xf32>, vector<32x32xf32>, vector<8x32xf32> -> vector<8x32xf32>
    %c1_16 = arith.constant 1 : index
    %c0_17 = arith.constant 0 : index
    %c0_18 = arith.constant 0 : index
    %17 = vector.load %arg3[%c1_16, %c0_17, %c0_18] : memref<7x1x32xf32, #tpu.memory_space<vmem>>, vector<1x1x32xf32>
    %18 = vector.shape_cast %17 : vector<1x1x32xf32> to vector<1x32xf32>
    %19 = vector.broadcast %18 : vector<1x32xf32> to vector<8x32xf32>
    %20 = arith.addf %16, %19 : vector<8x32xf32>
    %c2 = arith.constant 2 : index
    %c0_19 = arith.constant 0 : index
    %c0_20 = arith.constant 0 : index
    %21 = vector.load %arg4[%c2, %c0_19, %c0_20] : memref<8x8x32xf32, #tpu.memory_space<vmem>>, vector<1x8x32xf32>
    %22 = vector.shape_cast %21 : vector<1x8x32xf32> to vector<8x32xf32>
    %23 = vector.shape_cast %20 : vector<8x32xf32> to vector<1x8x32xf32>
    tpu.vector_store %arg4[%c2, %c0_19, %c0_20], %23 {strides = array<i32>} : memref<8x8x32xf32, #tpu.memory_space<vmem>>, vector<1x8x32xf32>,
    %c2_21 = arith.constant 2 : index
    %c0_22 = arith.constant 0 : index
    %c0_23 = arith.constant 0 : index
    %24 = vector.load %arg2[%c2_21, %c0_22, %c0_23] : memref<7x32x32xf32, #tpu.memory_space<vmem>>, vector<1x32x32xf32>
    %25 = vector.shape_cast %24 : vector<1x32x32xf32> to vector<32x32xf32>
    %cst_24 = arith.constant dense<0.000000e+00> : vector<8x32xf32>
    %26 = tpu.matmul %20, %25, %cst_24 {dimension_numbers = #tpu.dot_dimension_numbers<[1], [0], [0], [1], [0, 0, 1, 1], [], []>} : vector<8x32xf32>, vector<32x32xf32>, vector<8x32xf32> -> vector<8x32xf32>
    %c2_25 = arith.constant 2 : index
    %c0_26 = arith.constant 0 : index
    %c0_27 = arith.constant 0 : index
    %27 = vector.load %arg3[%c2_25, %c0_26, %c0_27] : memref<7x1x32xf32, #tpu.memory_space<vmem>>, vector<1x1x32xf32>
    %28 = vector.shape_cast %27 : vector<1x1x32xf32> to vector<1x32xf32>
    %29 = vector.broadcast %28 : vector<1x32xf32> to vector<8x32xf32>
    %30 = arith.addf %26, %29 : vector<8x32xf32>
    %c3 = arith.constant 3 : index
    %c0_28 = arith.constant 0 : index
    %c0_29 = arith.constant 0 : index
    %31 = vector.load %arg4[%c3, %c0_28, %c0_29] : memref<8x8x32xf32, #tpu.memory_space<vmem>>, vector<1x8x32xf32>
    %32 = vector.shape_cast %31 : vector<1x8x32xf32> to vector<8x32xf32>
    %33 = vector.shape_cast %30 : vector<8x32xf32> to vector<1x8x32xf32>
    tpu.vector_store %arg4[%c3, %c0_28, %c0_29], %33 {strides = array<i32>} : memref<8x8x32xf32, #tpu.memory_space<vmem>>, vector<1x8x32xf32>,
    %c3_30 = arith.constant 3 : index
    %c0_31 = arith.constant 0 : index
    %c0_32 = arith.constant 0 : index
    %34 = vector.load %arg2[%c3_30, %c0_31, %c0_32] : memref<7x32x32xf32, #tpu.memory_space<vmem>>, vector<1x32x32xf32>
    %35 = vector.shape_cast %34 : vector<1x32x32xf32> to vector<32x32xf32>
    %cst_33 = arith.constant dense<0.000000e+00> : vector<8x32xf32>
    %36 = tpu.matmul %30, %35, %cst_33 {dimension_numbers = #tpu.dot_dimension_numbers<[1], [0], [0], [1], [0, 0, 1, 1], [], []>} : vector<8x32xf32>, vector<32x32xf32>, vector<8x32xf32> -> vector<8x32xf32>
    %c3_34 = arith.constant 3 : index
    %c0_35 = arith.constant 0 : index
    %c0_36 = arith.constant 0 : index
    %37 = vector.load %arg3[%c3_34, %c0_35, %c0_36] : memref<7x1x32xf32, #tpu.memory_space<vmem>>, vector<1x1x32xf32>
    %38 = vector.shape_cast %37 : vector<1x1x32xf32> to vector<1x32xf32>
    %39 = vector.broadcast %38 : vector<1x32xf32> to vector<8x32xf32>
    %40 = arith.addf %36, %39 : vector<8x32xf32>
    %c4 = arith.constant 4 : index
    %c0_37 = arith.constant 0 : index
    %c0_38 = arith.constant 0 : index
    %41 = vector.load %arg4[%c4, %c0_37, %c0_38] : memref<8x8x32xf32, #tpu.memory_space<vmem>>, vector<1x8x32xf32>
    %42 = vector.shape_cast %41 : vector<1x8x32xf32> to vector<8x32xf32>
    %43 = vector.shape_cast %40 : vector<8x32xf32> to vector<1x8x32xf32>
    tpu.vector_store %arg4[%c4, %c0_37, %c0_38], %43 {strides = array<i32>} : memref<8x8x32xf32, #tpu.memory_space<vmem>>, vector<1x8x32xf32>,
    %c4_39 = arith.constant 4 : index
    %c0_40 = arith.constant 0 : index
    %c0_41 = arith.constant 0 : index
    %44 = vector.load %arg2[%c4_39, %c0_40, %c0_41] : memref<7x32x32xf32, #tpu.memory_space<vmem>>, vector<1x32x32xf32>
    %45 = vector.shape_cast %44 : vector<1x32x32xf32> to vector<32x32xf32>
    %cst_42 = arith.constant dense<0.000000e+00> : vector<8x32xf32>
    %46 = tpu.matmul %40, %45, %cst_42 {dimension_numbers = #tpu.dot_dimension_numbers<[1], [0], [0], [1], [0, 0, 1, 1], [], []>} : vector<8x32xf32>, vector<32x32xf32>, vector<8x32xf32> -> vector<8x32xf32>
    %c4_43 = arith.constant 4 : index
    %c0_44 = arith.constant 0 : index
    %c0_45 = arith.constant 0 : index
    %47 = vector.load %arg3[%c4_43, %c0_44, %c0_45] : memref<7x1x32xf32, #tpu.memory_space<vmem>>, vector<1x1x32xf32>
    %48 = vector.shape_cast %47 : vector<1x1x32xf32> to vector<1x32xf32>
    %49 = vector.broadcast %48 : vector<1x32xf32> to vector<8x32xf32>
    %50 = arith.addf %46, %49 : vector<8x32xf32>
    %c5 = arith.constant 5 : index
    %c0_46 = arith.constant 0 : index
    %c0_47 = arith.constant 0 : index
    %51 = vector.load %arg4[%c5, %c0_46, %c0_47] : memref<8x8x32xf32, #tpu.memory_space<vmem>>, vector<1x8x32xf32>
    %52 = vector.shape_cast %51 : vector<1x8x32xf32> to vector<8x32xf32>
    %53 = vector.shape_cast %50 : vector<8x32xf32> to vector<1x8x32xf32>
    tpu.vector_store %arg4[%c5, %c0_46, %c0_47], %53 {strides = array<i32>} : memref<8x8x32xf32, #tpu.memory_space<vmem>>, vector<1x8x32xf32>,
    %c5_48 = arith.constant 5 : index
    %c0_49 = arith.constant 0 : index
    %c0_50 = arith.constant 0 : index
    %54 = vector.load %arg2[%c5_48, %c0_49, %c0_50] : memref<7x32x32xf32, #tpu.memory_space<vmem>>, vector<1x32x32xf32>
    %55 = vector.shape_cast %54 : vector<1x32x32xf32> to vector<32x32xf32>
    %cst_51 = arith.constant dense<0.000000e+00> : vector<8x32xf32>
    %56 = tpu.matmul %50, %55, %cst_51 {dimension_numbers = #tpu.dot_dimension_numbers<[1], [0], [0], [1], [0, 0, 1, 1], [], []>} : vector<8x32xf32>, vector<32x32xf32>, vector<8x32xf32> -> vector<8x32xf32>
    %c5_52 = arith.constant 5 : index
    %c0_53 = arith.constant 0 : index
    %c0_54 = arith.constant 0 : index
    %57 = vector.load %arg3[%c5_52, %c0_53, %c0_54] : memref<7x1x32xf32, #tpu.memory_space<vmem>>, vector<1x1x32xf32>
    %58 = vector.shape_cast %57 : vector<1x1x32xf32> to vector<1x32xf32>
    %59 = vector.broadcast %58 : vector<1x32xf32> to vector<8x32xf32>
    %60 = arith.addf %56, %59 : vector<8x32xf32>
    %c6 = arith.constant 6 : index
    %c0_55 = arith.constant 0 : index
    %c0_56 = arith.constant 0 : index
    %61 = vector.load %arg4[%c6, %c0_55, %c0_56] : memref<8x8x32xf32, #tpu.memory_space<vmem>>, vector<1x8x32xf32>
    %62 = vector.shape_cast %61 : vector<1x8x32xf32> to vector<8x32xf32>
    %63 = vector.shape_cast %60 : vector<8x32xf32> to vector<1x8x32xf32>
    tpu.vector_store %arg4[%c6, %c0_55, %c0_56], %63 {strides = array<i32>} : memref<8x8x32xf32, #tpu.memory_space<vmem>>, vector<1x8x32xf32>,
    %c6_57 = arith.constant 6 : index
    %c0_58 = arith.constant 0 : index
    %c0_59 = arith.constant 0 : index
    %64 = vector.load %arg2[%c6_57, %c0_58, %c0_59] : memref<7x32x32xf32, #tpu.memory_space<vmem>>, vector<1x32x32xf32>
    %65 = vector.shape_cast %64 : vector<1x32x32xf32> to vector<32x32xf32>
    %cst_60 = arith.constant dense<0.000000e+00> : vector<8x32xf32>
    %66 = tpu.matmul %60, %65, %cst_60 {dimension_numbers = #tpu.dot_dimension_numbers<[1], [0], [0], [1], [0, 0, 1, 1], [], []>} : vector<8x32xf32>, vector<32x32xf32>, vector<8x32xf32> -> vector<8x32xf32>
    %c6_61 = arith.constant 6 : index
    %c0_62 = arith.constant 0 : index
    %c0_63 = arith.constant 0 : index
    %67 = vector.load %arg3[%c6_61, %c0_62, %c0_63] : memref<7x1x32xf32, #tpu.memory_space<vmem>>, vector<1x1x32xf32>
    %68 = vector.shape_cast %67 : vector<1x1x32xf32> to vector<1x32xf32>
    %69 = vector.broadcast %68 : vector<1x32xf32> to vector<8x32xf32>
    %70 = arith.addf %66, %69 : vector<8x32xf32>
    %c7 = arith.constant 7 : index
    %c0_64 = arith.constant 0 : index
    %c0_65 = arith.constant 0 : index
    %71 = vector.load %arg4[%c7, %c0_64, %c0_65] : memref<8x8x32xf32, #tpu.memory_space<vmem>>, vector<1x8x32xf32>
    %72 = vector.shape_cast %71 : vector<1x8x32xf32> to vector<8x32xf32>
    %73 = vector.shape_cast %70 : vector<8x32xf32> to vector<1x8x32xf32>
    tpu.vector_store %arg4[%c7, %c0_64, %c0_65], %73 {strides = array<i32>} : memref<8x8x32xf32, #tpu.memory_space<vmem>>, vector<1x8x32xf32>,
    return
  }
  func.func @transform_0(%arg0: i32) -> (i32, i32) {
    %c0_i32 = arith.constant 0 : i32
    %c0_i32_0 = arith.constant 0 : i32
    %c0_i32_1 = arith.constant 0 : i32
    return %c0_i32, %c0_i32_0 : i32, i32
  }
  func.func @transform_1(%arg0: i32) -> (i32, i32, i32) {
    %c0_i32 = arith.constant 0 : i32
    %c0_i32_0 = arith.constant 0 : i32
    %c0_i32_1 = arith.constant 0 : i32
    %c0_i32_2 = arith.constant 0 : i32
    return %c0_i32, %c0_i32_0, %c0_i32_1 : i32, i32, i32
  }
  func.func @transform_2(%arg0: i32) -> (i32, i32, i32) {
    %c0_i32 = arith.constant 0 : i32
    %c0_i32_0 = arith.constant 0 : i32
    %c0_i32_1 = arith.constant 0 : i32
    %c0_i32_2 = arith.constant 0 : i32
    return %c0_i32, %c0_i32_0, %c0_i32_1 : i32, i32, i32
  }
  func.func @transform_3(%arg0: i32) -> (i32, i32, i32) {
    %c0_i32 = arith.constant 0 : i32
    %c0_i32_0 = arith.constant 0 : i32
    %c0_i32_1 = arith.constant 0 : i32
    %c0_i32_2 = arith.constant 0 : i32
    return %c0_i32, %c0_i32_0, %c0_i32_1 : i32, i32, i32
  }
}

</mosaic_0001>

<bundles_post_ra>
// kernel: tpu_custom_call.1
= control target key start
LH: loop header
LB: loop body
LE: loop exit
PB: predicated region body
PF: predicated region fallthrough
CT: control target
= control target key end

     0   :  { %8 = vsyncpa [#allocation3], 0  ;;  %s1071_s0 = inlined_call_operand.hbm [shape: f32[8,32], index: 0, kind: input, shape index: {}]   ;;  %s1072_s1 = inlined_call_operand.hbm [shape: f32[7,32,32], index: 1, kind: input, shape index: {}]   ;;  %s1073_s2 = inlined_call_operand.vmem [shape: f32[7,1,32], index: 2, kind: input, shape index: {}]   ;;  %s1074_s3 = inlined_call_operand.hbm [shape: f32[8,8,32], index: 3, kind: output, shape index: {}]  }
   0x1   :  { %9 = vsyncpa [#allocation6], 0 }
   0x2   :  { %10 = vsyncpa [#allocation4], 0  ;;  %s930_s12 = smov [#allocation2]   ;;  %s931_s14 = smov [#allocation5]  }
   0x3   :  { %s17_s13 = sshll.u32 %s930_s12, 4  ;;  %s26_s15 = sshll.u32 %s931_s14, 4  ;;  %s18_s13 = int_to_ptr.vmem [resolvable:$true] %s17_s13  ;;  %s958_s15 = int_to_ptr.vmem [resolvable:$true] %s26_s15 }
   0x4   :  { %s858_s18 = scalar_lea.hbm %s1071_s0, 128 }
   0x5   :  { %p859_p0 = scmp.ne.s32.totalorder %s1071_s0, %s858_s18  ;;  %p862_p1 = scmp.lt.u32.totalorder %s858_s18, %s1071_s0 }
   0x7   :  { %p864_p2 = pnand %p862_p1, %p859_p0 }
   0x9   :  { %867 = shalt.err (!%p864_p2)
}
   0xa   :  { %s868_s23 = scalar_lea.vmem %s18_s13, 128  ;;  %p873_p4 = scmp.lt.s32.totalorder %s18_s13, %s18_s13 }
   0xb   :  { %p869_p3 = scmp.ne.s32.totalorder %s18_s13, %s868_s23  ;;  %p874_p5 = scmp.lt.s32.totalorder %s868_s23, %s868_s23 }
   0xd   :  { %p875_p6 = por %p874_p5, %p873_p4 }
   0xf   :  { %p876_p7 = pnand %p875_p6, %p869_p3 }
  0x11   :  { %879 = shalt.err (!%p876_p7)
}
  0x12   :  { %20 = dma.hbm_to_vmem [thread:$0]  %s1071_s0, 128, %s18_s13, [#allocation3]  }
  0x13   :  { %s880_s28 = scalar_lea.hbm %s1072_s1, 3584 }
  0x14   :  { %p881_p8 = scmp.ne.s32.totalorder %s1072_s1, %s880_s28  ;;  %p884_p9 = scmp.lt.u32.totalorder %s880_s28, %s1072_s1 }
  0x16   :  { %p886_p10 = pnand %p884_p9, %p881_p8 }
  0x18   :  { %889 = shalt.err (!%p886_p10)
}
  0x19   :  { %s890_s6 = scalar_lea.vmem %s958_s15, 3584  ;;  %p895_p12 = scmp.lt.s32.totalorder %s958_s15, %s958_s15 }
  0x1a   :  { %p891_p11 = scmp.ne.s32.totalorder %s958_s15, %s890_s6  ;;  %p896_p13 = scmp.lt.s32.totalorder %s890_s6, %s890_s6 }
  0x1c   :  { %p897_p0 = por %p896_p13, %p895_p12 }
  0x1e   :  { %p898_p1 = pnand %p897_p0, %p891_p11 }
  0x20   :  { %901 = shalt.err (!%p898_p1)
}
  0x21   :  { %s932_s0 = smov 128   ;;  %s933_s7 = smov 8  }
  0x22   :  { %32 = dma.hbm_to_vmem [thread:$0]  %s1072_s1, 3584, %s958_s15, [#allocation6], %s932_s0, %s932_s0, %s933_s7  }
  0x23   :  { %924 = dma.done.wait [#allocation3], 128  }
  0x24   :  { %925 = vsyncadd [#allocation3], 4294967168 }
  0x25   :  { %926 = dma.done.wait [#allocation6], 3584  }
  0x26   :  { %927 = vsyncadd [#allocation6], 4294963712  ;;  %v934_v0 = vmov 0.0|0.0   ;;  %vm935_vm0 = vmmov 0   ;;  %v936_v1 = vmov 0.0   ;;  %v44_v2 = vld [vmem:[#allocation5] sm:$0xff] }
  0x27   :  { %808 = vmatprep.subr.bf16.mxu0 %v934_v0  ;;  %739 = vmatprep.mubr.msk.f32.mxu0 %vm935_vm0, %v936_v1  ;;  %v45_v3 = vld [vmem:[#allocation5 + $0x8] sm:$0xff]  ;;  %v46_v4 = vld [vmem:[#allocation5 + $0x10] sm:$0xff]  ;;  %v47_v6 = vld [vmem:[#allocation5 + $0x18] sm:$0xff]  ;;  %vm42_vm1 = vcmask 261120   ;;  %s937_s23 = smov [#allocation7]  }
  0x28   :  { %814 = vmatprep.subr.bf16.mxu1 %v934_v0  ;;  %750 = vmatprep.mubr.msk.f32.mxu1 %vm935_vm0, %v936_v1  ;;  %v809_v5 = vpack.c.bf16 %v45_v3, %v44_v2  ;;  %v41_v7 = vld [vmem:[#allocation2] sm:$0xff]  ;;  %v131_v8 = vld [vmem:[#allocation5 + $0x20] sm:$0xff]  ;;  %v132_v9 = vld [vmem:[#allocation5 + $0x28] sm:$0xff]  ;;  %v812_v10 = vpack.c.bf16 %v47_v6, %v46_v4  ;;  %s663_s24 = sshll.u32 %s937_s23, 4  ;;  %s664_s24 = int_to_ptr.vmem [resolvable:$true] %s663_s24 }
  0x29   :  { %43 = vst.msk [vmem:[#allocation7] sm:$0xff] %vm42_vm1, %v41_v7  ;;  %v815_v11 = vpack.c.bf16 %v132_v9, %v131_v8  ;;  %v133_v12 = vld [vmem:[#allocation5 + $0x30] sm:$0xff]  ;;  %v134_v13 = vld [vmem:[#allocation5 + $0x38] sm:$0xff]  ;;  %v219_v15 = vld [vmem:[#allocation5 + $0x40] sm:$0xff]  ;;  %s902_s25 = scalar_lea.vmem %s664_s24, 1024  ;;  %p907_p3 = scmp.lt.s32.totalorder %s664_s24, %s664_s24 }
  0x2a   :  { %810 = vmatpush3.bf16.msra.mxu0 %v809_v5  ;;  %v818_v14 = vpack.c.bf16 %v134_v13, %v133_v12  ;;  %v220_v16 = vld [vmem:[#allocation5 + $0x48] sm:$0xff]  ;;  %v676_v18 = vld [vmem:[%s1073_s2] ss:$0 sm:$0xff]  ;;  %v221_v22 = vld [vmem:[#allocation5 + $0x50] sm:$0xff]  ;;  %p903_p2 = scmp.ne.s32.totalorder %s664_s24, %s902_s25  ;;  %p908_p4 = scmp.lt.s32.totalorder %s902_s25, %s902_s25 }
  0x2b   :  { %811 = vmatprep.subr.bf16.mxu0 %v934_v0  ;;  %816 = vmatpush3.bf16.msra.mxu1 %v815_v11  ;;  %v821_v17 = vpack.c.bf16 %v220_v16, %v219_v15  ;;  %v222_v23 = vld [vmem:[#allocation5 + $0x58] sm:$0xff]  ;;  %v307_v25 = vld [vmem:[#allocation5 + $0x60] sm:$0xff]  ;;  %v308_v26 = vld [vmem:[#allocation5 + $0x68] sm:$0xff] }
  0x2c   :  { %817 = vmatprep.subr.bf16.mxu1 %v934_v0  ;;  %v824_v24 = vpack.c.bf16 %v222_v23, %v221_v22  ;;  %v827_v27 = vpack.c.bf16 %v308_v26, %v307_v25  ;;  %v679_v28 = vld [vmem:[%s1073_s2 + $0x1] ss:$0 sm:$0xff]  ;;  %v309_v32 = vld [vmem:[#allocation5 + $0x70] sm:$0xff]  ;;  %v395_v35 = vld [vmem:[#allocation5 + $0x80] sm:$0xff]  ;;  %p909_p5 = por %p908_p4, %p907_p3 }
  0x2d   :  { %v310_v33 = vld [vmem:[#allocation5 + $0x78] sm:$0xff]  ;;  %v396_v36 = vld [vmem:[#allocation5 + $0x88] sm:$0xff]  ;;  %v397_v42 = vld [vmem:[#allocation5 + $0x90] sm:$0xff] }
  0x2e   :  { %813 = vmatpush3.bf16.msra.mxu0 %v812_v10  ;;  %v830_v34 = vpack.c.bf16 %v310_v33, %v309_v32  ;;  %v833_v37 = vpack.c.bf16 %v396_v36, %v395_v35  ;;  %v682_v38 = vld [vmem:[%s1073_s2 + $0x2] ss:$0 sm:$0xff]  ;;  %v483_v45 = vld [vmem:[#allocation5 + $0xa0] sm:$0xff]  ;;  %v484_v46 = vld [vmem:[#allocation5 + $0xa8] sm:$0xff]  ;;  %p910_p6 = pnand %p909_p5, %p903_p2 }
  0x2f   :  { %820 = vmatprep.subr.bf16.mxu0 %v934_v0  ;;  %819 = vmatpush3.bf16.msra.mxu1 %v818_v14  ;;  %v398_v43 = vld [vmem:[#allocation5 + $0x98] sm:$0xff]  ;;  %v839_v47 = vpack.c.bf16 %v484_v46, %v483_v45  ;;  %v485_v52 = vld [vmem:[#allocation5 + $0xb0] sm:$0xff]  ;;  %v571_v55 = vld [vmem:[#allocation5 + $0xc0] sm:$0xff] }
  0x30   :  { %826 = vmatprep.subr.bf16.mxu1 %v934_v0  ;;  %v836_v44 = vpack.c.bf16 %v398_v43, %v397_v42  ;;  %v685_v48 = vld [vmem:[%s1073_s2 + $0x3] ss:$0 sm:$0xff]  ;;  %v572_v56 = vld [vmem:[#allocation5 + $0xc8] sm:$0xff]  ;;  %v688_v58 = vld [vmem:[%s1073_s2 + $0x4] ss:$0 sm:$0xff] }
  0x31   :  { %740 = vmatmul.mubr.msk.f32.vlgmr.msra.gmra.mrb[0].mxu0 %vm42_vm1, %v41_v7  ;;  %v486_v53 = vld [vmem:[#allocation5 + $0xb8] sm:$0xff]  ;;  %v845_v57 = vpack.c.bf16 %v572_v56, %v571_v55  ;;  %v573_v62 = vld [vmem:[#allocation5 + $0xd0] sm:$0xff] }
  0x32   :  { %761 = vmatprep.mubr.msk.f32.mxu0 %vm935_vm0, %v936_v1  ;;  %822 = vmatpush3.bf16.msra.mxu0 %v821_v17  ;;  %v842_v54 = vpack.c.bf16 %v486_v53, %v485_v52  ;;  %v574_v63 = vld [vmem:[#allocation5 + $0xd8] sm:$0xff] }
  0x33   :  { %823 = vmatprep.subr.bf16.mxu0 %v934_v0  ;;  %v691_v2 = vld [vmem:[%s1073_s2 + $0x5] ss:$0 sm:$0xff]  ;;  %v694_v5 = vld [vmem:[%s1073_s2 + $0x6] ss:$0 sm:$0xff] }
  0x36   :  { %825 = vmatpush3.bf16.msra.mxu0 %v824_v24 }
  0x37   :  { %832 = vmatprep.subr.bf16.mxu0 %v934_v0 }
 0x104   :  { %v124_v19 = vpop.f32.mrb[0].mxu0 }
 0x105   :  { %v125_v20 = vadd.f32 %v676_v18, %v124_v19  ;;  %v741_v21 = vpop.f32.mrb[1].mxu0 }
 0x107   :  { %129 = vst.msk [vmem:[#allocation7 + $0x8] sm:$0xff] %vm42_vm1, %v125_v20  ;;  %751 = vmatmul.mubr.msk.f32.vlgmr.msra.gmra.mrb[0].mxu1 %vm42_vm1, %v125_v20 }
 0x108   :  { %772 = vmatprep.mubr.msk.f32.mxu1 %vm935_vm0, %v936_v1  ;;  %828 = vmatpush3.bf16.msra.mxu1 %v827_v27 }
 0x109   :  { %829 = vmatprep.subr.bf16.mxu1 %v934_v0 }
 0x10c   :  { %831 = vmatpush3.bf16.msra.mxu1 %v830_v34 }
 0x10d   :  { %838 = vmatprep.subr.bf16.mxu1 %v934_v0 }
 0x1da   :  { %v212_v29 = vpop.f32.mrb[0].mxu1 }
 0x1db   :  { %v213_v30 = vadd.f32 %v679_v28, %v212_v29  ;;  %v752_v31 = vpop.f32.mrb[1].mxu1 }
 0x1dd   :  { %217 = vst.msk [vmem:[#allocation7 + $0x10] sm:$0xff] %vm42_vm1, %v213_v30  ;;  %762 = vmatmul.mubr.msk.f32.vlgmr.msra.gmra.mrb[2].mxu0 %vm42_vm1, %v213_v30 }
 0x1de   :  { %783 = vmatprep.mubr.msk.f32.mxu0 %vm935_vm0, %v936_v1  ;;  %834 = vmatpush3.bf16.msra.mxu0 %v833_v37 }
 0x1df   :  { %835 = vmatprep.subr.bf16.mxu0 %v934_v0 }
 0x1e2   :  { %837 = vmatpush3.bf16.msra.mxu0 %v836_v44 }
 0x1e3   :  { %844 = vmatprep.subr.bf16.mxu0 %v934_v0 }
 0x2b0   :  { %v300_v39 = vpop.f32.mrb[2].mxu0 }
 0x2b1   :  { %v301_v40 = vadd.f32 %v682_v38, %v300_v39  ;;  %v763_v41 = vpop.f32.mrb[3].mxu0 }
 0x2b3   :  { %305 = vst.msk [vmem:[#allocation7 + $0x18] sm:$0xff] %vm42_vm1, %v301_v40  ;;  %773 = vmatmul.mubr.msk.f32.vlgmr.msra.gmra.mrb[2].mxu1 %vm42_vm1, %v301_v40 }
 0x2b4   :  { %794 = vmatprep.mubr.msk.f32.mxu1 %vm935_vm0, %v936_v1  ;;  %840 = vmatpush3.bf16.msra.mxu1 %v839_v47 }
 0x2b5   :  { %841 = vmatprep.subr.bf16.mxu1 %v934_v0 }
 0x2b8   :  { %843 = vmatpush3.bf16.msra.mxu1 %v842_v54 }
 0x386   :  { %v388_v49 = vpop.f32.mrb[2].mxu1 }
 0x387   :  { %v389_v50 = vadd.f32 %v685_v48, %v388_v49  ;;  %v774_v51 = vpop.f32.mrb[3].mxu1 }
 0x389   :  { %393 = vst.msk [vmem:[#allocation7 + $0x20] sm:$0xff] %vm42_vm1, %v389_v50  ;;  %784 = vmatmul.mubr.msk.f32.vlgmr.msra.gmra.mrb[4].mxu0 %vm42_vm1, %v389_v50 }
 0x38a   :  { %805 = vmatprep.mubr.msk.f32.mxu0 %vm935_vm0, %v936_v1  ;;  %846 = vmatpush3.bf16.msra.mxu0 %v845_v57  ;;  %v848_v1 = vpack.c.bf16 %v574_v63, %v573_v62 }
 0x38b   :  { %847 = vmatprep.subr.bf16.mxu0 %v934_v0 }
 0x38e   :  { %849 = vmatpush3.bf16.msra.mxu0 %v848_v1 }
 0x45c   :  { %v476_v59 = vpop.f32.mrb[4].mxu0 }
 0x45d   :  { %v477_v60 = vadd.f32 %v688_v58, %v476_v59  ;;  %v785_v61 = vpop.f32.mrb[5].mxu0 }
 0x45f   :  { %481 = vst.msk [vmem:[#allocation7 + $0x28] sm:$0xff] %vm42_vm1, %v477_v60  ;;  %795 = vmatmul.mubr.msk.f32.vlgmr.msra.gmra.mrb[4].mxu1 %vm42_vm1, %v477_v60 }
 0x532   :  { %v564_v0 = vpop.f32.mrb[4].mxu1 }
 0x533   :  { %v565_v3 = vadd.f32 %v691_v2, %v564_v0  ;;  %v796_v4 = vpop.f32.mrb[5].mxu1 }
 0x535   :  { %569 = vst.msk [vmem:[#allocation7 + $0x30] sm:$0xff] %vm42_vm1, %v565_v3  ;;  %806 = vmatmul.mubr.msk.f32.vlgmr.msra.gmra.mrb[6].mxu0 %vm42_vm1, %v565_v3 }
 0x608   :  { %v652_v6 = vpop.f32.mrb[6].mxu0 }
 0x609   :  { %v653_v7 = vadd.f32 %v694_v5, %v652_v6  ;;  %v807_v8 = vpop.f32.mrb[7].mxu0 }
 0x60b   :  { %657 = vst.msk [vmem:[#allocation7 + $0x38] sm:$0xff] %vm42_vm1, %v653_v7 }
 0x60c   :  { %913 = shalt.err (!%p910_p6)
}
 0x60d   :  { %s914_s28 = scalar_lea.hbm %s1074_s3, 1024 }
 0x60e   :  { %p915_p7 = scmp.ne.s32.totalorder %s1074_s3, %s914_s28  ;;  %p918_p8 = scmp.lt.u32.totalorder %s914_s28, %s1074_s3 }
 0x610   :  { %p920_p9 = pnand %p918_p8, %p915_p7 }
 0x612   :  { %923 = shalt.err (!%p920_p9)
}
 0x613   :  { %669 = dma.vmem_to_hbm [thread:$0]  %s664_s24, 1024, %s1074_s3, [#allocation4], %s932_s0, %s932_s0, %s933_s7  }
 0x614   :  { %928 = dma.done.wait [#allocation4], 1024  }
 0x615   :  { %929 = vsyncadd [#allocation4], 4294966272 }
 0x616   :  { %673 = vsyncpa [#allocation3], 1 }
 0x617   :  { %674 = vsyncpa [#allocation6], 1 }
 0x618   :  { %675 = vsyncpa [#allocation4], 1 }

</bundles_post_ra>
